<compile_context>
chip_gen: v7x
topology: tpu7x:2x2x1
jax: 0.10.0
libtpu: 0.0.40
codegen_flags: <defaults>
</compile_context>

<pallas_src>
import math

import jax
import jax.numpy as jnp
from jax.experimental import pallas as pl
from jax.experimental.pallas import tpu as pltpu

HIDDEN_DIM = 32
INPUT_DIM = 1
NUM_LAYERS = 2
OUTPUT_DIM = 1


def _lstm_kernel(x_ref,        # (T, B_pad, D_in)  time-major input
                 w0w_ref,      # (D_in, 8H)  W_ih_l0^T scattered into layer-0 gate slots
                 bw_ref,       # (1, 8H)     [b0_i b1_i | b0_f b1_f | b0_g b1_g | b0_o b1_o]
                 wfused_ref,   # (2H, 8H)    fused recurrent weight (see wrapper)
                 wdrain_ref,   # (2H, 4H)    [[W_ih_l1^T], [W_hh_l1^T]]
                 b1_ref,       # (1, 4H)     b_ih_l1 + b_hh_l1 (drain only)
                 wfc_ref,      # (1, H)      fc weight row (D_out == 1)
                 bfc_ref,      # (1, D_out)
                 out_ref,      # (B_pad, D_out)
                 xp_scr):      # VMEM scratch (T, B_pad, 8H)
    T, B, Din = x_ref.shape
    H = wdrain_ref.shape[0] // 2
    G2, G4, G8 = 2 * H, 4 * H, 8 * H

    # ---- One-time precompute (off the recurrence): per-timestep additive term
    # xp[t] = [x_t @ Wih0^T + b0  |  b1] in the cross-layer gate-group lane layout
    # [i0 i1 | f0 f1 | g0 g1 | o0 o1].  D_in is tiny (=1) so this is a VPU
    # broadcast multiply.  Stored to VMEM scratch so the (T, B, 8H) slab is not
    # held in vregs across the unrolled time loop.
    x = x_ref[...]                                            # (T, B, D_in)
    w0w = w0w_ref[...]                                        # (D_in, 8H)
    xp = x[:, :, 0:1] * jnp.reshape(w0w[0:1, :], (1, 1, G8))
    for d in range(1, Din):
        xp = xp + x[:, :, d:d + 1] * jnp.reshape(w0w[d:d + 1, :], (1, 1, G8))
    xp_scr[...] = xp + jnp.reshape(bw_ref[...], (1, 1, G8))

    lane = jax.lax.broadcasted_iota(jnp.int32, (1, G2), 1)    # packed-state lane ids

    def packed_update(gates, c_prev):
        # gates: (B, 8H) = [i0 i1 | f0 f1 | g0 g1 | o0 o1] — both layers at once.
        # 3 full-vreg EUP calls + one (B, 2H) tanh; elementwise tail on (B, 2H).
        sig_if = jax.nn.sigmoid(gates[:, :G4])
        go = gates[:, G4:]
        tanh_go = jnp.tanh(go)
        sig_go = jax.nn.sigmoid(go)
        i = sig_if[:, :G2]
        f = sig_if[:, G2:]
        g = tanh_go[:, :G2]
        o = sig_go[:, G2:]
        c_new = f * c_prev + i * g
        h_new = o * jnp.tanh(c_new)
        return h_new, c_new

    # ---- t = 0: h(-1) == 0, so the recurrent matmul vanishes; gates = xp[0].
    c_init = jnp.zeros((B, G2), jnp.float32)
    h, c = packed_update(xp_scr[0], c_init)
    # xp[0]'s layer-1 slots carry the folded b1; zero that layer's state so it
    # matches h1(-1) = c1(-1) = 0 in the wavefront schedule.
    h = jnp.where(lane < H, h, 0.0)
    c = jnp.where(lane < H, c, 0.0)

    # ---- Wavefront loop (fully unrolled; T is small & static).  Each step does ONE
    # (B, 2H) x (2H, 8H) MXU matmul producing layer-0 gates at t and layer-1 gates
    # at t-1; h/c stay packed as [layer0 | layer1] lane halves, so there is no
    # per-step concatenate and both biases ride in the single xp[t] add.
    # f32 operands with default MXU precision kept on purpose (1e-5 tolerance).
    # TODO(synk): stage the identical (2H, 8H) RHS once via pltpu.matmul_push_rhs /
    # matmul_acc_lhs / matmul_pop instead of re-pushing it every step.
    for t in range(1, T):
        z = jnp.dot(h, wfused_ref[...], preferred_element_type=jnp.float32)  # (B, 8H)
        h, c = packed_update(z + xp_scr[t], c)

    # ---- Drain: layer 1 at the final timestep, using only the layer-1 half of the
    # recurrent weight ((2H, 4H) -> half the MXU work of a fused step).
    z1 = (jnp.dot(h, wdrain_ref[...], preferred_element_type=jnp.float32)
          + b1_ref[...])                                      # (B, 4H) [i f g o]
    sig1 = jax.nn.sigmoid(z1)
    tanh1 = jnp.tanh(z1)
    i1 = sig1[:, 0 * H:1 * H]
    f1 = sig1[:, 1 * H:2 * H]
    g1 = tanh1[:, 2 * H:3 * H]
    o1 = sig1[:, 3 * H:4 * H]
    c1 = f1 * c[:, H:G2] + i1 * g1
    h1 = o1 * jnp.tanh(c1)

    # ---- fc(out[:, -1, :]) with D_out == 1: VPU multiply + XLU lane reduction
    # (avoids a second MXU weight load for a single useful output column).
    out_ref[...] = (jnp.sum(h1 * wfc_ref[...], axis=-1, keepdims=True)
                    + bfc_ref[...])


def init_params(key, input_dim=INPUT_DIM, hidden_dim=HIDDEN_DIM,
                output_dim=OUTPUT_DIM):
    """Deterministic init matching PyTorch's uniform(-1/sqrt(H), 1/sqrt(H))."""
    k = 1.0 / math.sqrt(hidden_dim)
    keys = jax.random.split(key, 10)

    def u(kk, shape):
        return jax.random.uniform(kk, shape, jnp.float32, minval=-k, maxval=k)

    return {
        # layer 0 (input_dim -> hidden)
        "w_ih_l0": u(keys[0], (4 * hidden_dim, input_dim)),
        "w_hh_l0": u(keys[1], (4 * hidden_dim, hidden_dim)),
        "b_ih_l0": u(keys[2], (4 * hidden_dim,)),
        "b_hh_l0": u(keys[3], (4 * hidden_dim,)),
        # layer 1 (hidden -> hidden)
        "w_ih_l1": u(keys[4], (4 * hidden_dim, hidden_dim)),
        "w_hh_l1": u(keys[5], (4 * hidden_dim, hidden_dim)),
        "b_ih_l1": u(keys[6], (4 * hidden_dim,)),
        "b_hh_l1": u(keys[7], (4 * hidden_dim,)),
        # fc
        "w_fc": u(keys[8], (output_dim, hidden_dim)),
        "b_fc": u(keys[9], (output_dim,)),
    }


@jax.jit
def lstm_forward(x, params):
    """x: (B, T, D_in) float32 -> (B, D_out) float32."""
    B, T, Din = x.shape
    H = HIDDEN_DIM
    Dout = OUTPUT_DIM
    f32 = jnp.float32

    # Pad batch to a multiple of 8 sublanes; padded rows are discarded at the end.
    B_pad = max(8, ((B + 7) // 8) * 8)
    x_tm = jnp.transpose(x, (1, 0, 2)).astype(f32)            # (T, B, D_in)
    if B_pad != B:
        x_tm = jnp.pad(x_tm, ((0, 0), (0, B_pad - B), (0, 0)))

    # PyTorch weights, transposed; columns in gate order [i, f, g, o].
    wih0 = params["w_ih_l0"].T.astype(f32)                    # (D_in, 4H)
    whh0 = params["w_hh_l0"].T.astype(f32)                    # (H, 4H)
    wih1 = params["w_ih_l1"].T.astype(f32)                    # (H, 4H)
    whh1 = params["w_hh_l1"].T.astype(f32)                    # (H, 4H)
    b0 = (params["b_ih_l0"] + params["b_hh_l0"]).astype(f32)  # (4H,)
    b1 = (params["b_ih_l1"] + params["b_hh_l1"]).astype(f32)  # (4H,)

    def gate(w, gi):  # gate-column block gi of a (rows, 4H) weight
        return w[:, gi * H:(gi + 1) * H]

    # Fused recurrent weight for the layer wavefront, columns in cross-layer
    # gate-group order [i0 i1 | f0 f1 | g0 g1 | o0 o1]:
    #   [h0(t-1) | h1(t-2)] @ w_fused  ->  layer-0 gates(t) and layer-1 gates(t-1).
    zhh = jnp.zeros((H, H), f32)
    top = jnp.concatenate([blk for gi in range(4)
                           for blk in (gate(whh0, gi), gate(wih1, gi))], axis=1)
    bot = jnp.concatenate([blk for gi in range(4)
                           for blk in (zhh, gate(whh1, gi))], axis=1)
    w_fused = jnp.concatenate([top, bot], axis=0)             # (2H, 8H)

    # Layer-0 input weight & both biases scattered into the same 8H gate-group
    # layout (pure weight-layout plumbing; b1 folded into the layer-1 slots).
    zin = jnp.zeros((Din, H), f32)
    w0_wide = jnp.concatenate([blk for gi in range(4)
                               for blk in (gate(wih0, gi), zin)], axis=1)   # (D_in, 8H)
    b_wide = jnp.concatenate([seg for gi in range(4)
                              for seg in (b0[gi * H:(gi + 1) * H],
                                          b1[gi * H:(gi + 1) * H])]).reshape(1, 8 * H)

    # Drain weight: layer 1 only, standard [i f g o] column order.
    w_drain = jnp.concatenate([wih1, whh1], axis=0)           # (2H, 4H)
    b1_row = b1.reshape(1, 4 * H)

    wfc = params["w_fc"].astype(f32).reshape(1, H)            # D_out == 1
    bfc = params["b_fc"].astype(f32).reshape(1, Dout)

    vmem = pl.BlockSpec(memory_space=pltpu.MemorySpace.VMEM)
    # No grid: the whole problem (~250 KB) is VMEM-resident and serial-latency
    # bound; grid steps would only add per-step overhead.
    # TODO(synk): for large B, add a batch grid axis with
    # dimension_semantics=("parallel",) and tile x / the xp scratch over T.
    out = pl.pallas_call(
        _lstm_kernel,
        out_shape=jax.ShapeDtypeStruct((B_pad, Dout), f32),
        in_specs=[vmem] * 8,
        out_specs=vmem,
        scratch_shapes=[pltpu.VMEM((T, B_pad, 8 * H), f32)],
    )(x_tm, w0_wide, b_wide, w_fused, w_drain, b1_row, wfc, bfc)
    return out[:B]


def lstm_reference(x, params):
    """Pure-JAX reference replicating torch.nn.LSTM semantics."""
    B, T, _ = x.shape
    H = HIDDEN_DIM

    def cell(x_t, h, c, w_ih, w_hh, b_ih, b_hh):
        gates = x_t @ w_ih.T + b_ih + h @ w_hh.T + b_hh
        i = jax.nn.sigmoid(gates[:, 0 * H:1 * H])
        f = jax.nn.sigmoid(gates[:, 1 * H:2 * H])
        g = jnp.tanh(gates[:, 2 * H:3 * H])
        o = jax.nn.sigmoid(gates[:, 3 * H:4 * H])
        c = f * c + i * g
        h = o * jnp.tanh(c)
        return h, c

    h0 = jnp.zeros((B, H), jnp.float32)
    c0 = jnp.zeros((B, H), jnp.float32)
    h1 = jnp.zeros((B, H), jnp.float32)
    c1 = jnp.zeros((B, H), jnp.float32)
    for t in range(T):
        x_t = x[:, t, :]
        h0, c0 = cell(x_t, h0, c0, params["w_ih_l0"], params["w_hh_l0"],
                      params["b_ih_l0"], params["b_hh_l0"])
        h1, c1 = cell(h0, h1, c1, params["w_ih_l1"], params["w_hh_l1"],
                      params["b_ih_l1"], params["b_hh_l1"])
    return h1 @ params["w_fc"].T + params["b_fc"]


if __name__ == "__main__":
    key = jax.random.PRNGKey(0)
    k_x, k_p = jax.random.split(key)

    B, T = 2, 8
    x = jax.random.normal(k_x, (B, T, INPUT_DIM), dtype=jnp.float32)
    params = init_params(k_p)

    out = jax.block_until_ready(lstm_forward(x, params))
    ref = jax.block_until_ready(lstm_reference(x, params))

    assert out.shape == (B, OUTPUT_DIM), out.shape
    assert jnp.allclose(out, ref, atol=1e-5, rtol=1e-5), (out, ref)
    print("KERNEL_OK")
</pallas_src>

<mosaic_0001>
module attributes {stable_mosaic.version = 11 : i64} {
  func.func @_lstm_kernel(%arg0: memref<8x8x1xf32, #tpu.memory_space<vmem>>, %arg1: memref<1x256xf32, #tpu.memory_space<vmem>>, %arg2: memref<1x256xf32, #tpu.memory_space<vmem>>, %arg3: memref<64x256xf32, #tpu.memory_space<vmem>>, %arg4: memref<64x128xf32, #tpu.memory_space<vmem>>, %arg5: memref<1x128xf32, #tpu.memory_space<vmem>>, %arg6: memref<1x32xf32, #tpu.memory_space<vmem>>, %arg7: memref<1x1xf32, #tpu.memory_space<vmem>>, %arg8: memref<8x1xf32, #tpu.memory_space<vmem>>, %arg9: memref<8x8x256xf32, #tpu.memory_space<vmem>>) attributes {dimension_semantics = [], scalar_prefetch = 0 : i64, scratch_operands = 1 : i64, tpu.core_type = #tpu.core_type<tc>} {
    %c0 = arith.constant 0 : index
    %c0_0 = arith.constant 0 : index
    %c0_1 = arith.constant 0 : index
    %0 = vector.load %arg0[%c0, %c0_0, %c0_1] : memref<8x8x1xf32, #tpu.memory_space<vmem>>, vector<8x8x1xf32>
    %c0_2 = arith.constant 0 : index
    %c0_3 = arith.constant 0 : index
    %1 = vector.load %arg1[%c0_2, %c0_3] : memref<1x256xf32, #tpu.memory_space<vmem>>, vector<1x256xf32>
    %2 = vector.shape_cast %1 : vector<1x256xf32> to vector<1x1x256xf32>
    %3 = vector.broadcast %0 : vector<8x8x1xf32> to vector<8x8x256xf32>
    %4 = vector.broadcast %2 : vector<1x1x256xf32> to vector<8x8x256xf32>
    %5 = arith.mulf %3, %4 : vector<8x8x256xf32>
    %c0_4 = arith.constant 0 : index
    %c0_5 = arith.constant 0 : index
    %6 = vector.load %arg2[%c0_4, %c0_5] : memref<1x256xf32, #tpu.memory_space<vmem>>, vector<1x256xf32>
    %7 = vector.shape_cast %6 : vector<1x256xf32> to vector<1x1x256xf32>
    %8 = vector.broadcast %7 : vector<1x1x256xf32> to vector<8x8x256xf32>
    %9 = arith.addf %5, %8 : vector<8x8x256xf32>
    %c0_6 = arith.constant 0 : index
    %c0_7 = arith.constant 0 : index
    %c0_8 = arith.constant 0 : index
    %10 = vector.load %arg9[%c0_6, %c0_7, %c0_8] : memref<8x8x256xf32, #tpu.memory_space<vmem>>, vector<8x8x256xf32>
    tpu.vector_store %arg9[%c0_6, %c0_7, %c0_8], %9 {strides = array<i32>} : memref<8x8x256xf32, #tpu.memory_space<vmem>>, vector<8x8x256xf32>,
    %11 = tpu.iota {dimensions = array<i32: 1>} : vector<1x64xi32>
    %cst = arith.constant 0.000000e+00 : f32
    %12 = vector.broadcast %cst : f32 to vector<8x64xf32>
    %c0_9 = arith.constant 0 : index
    %c0_10 = arith.constant 0 : index
    %c0_11 = arith.constant 0 : index
    %13 = vector.load %arg9[%c0_9, %c0_10, %c0_11] : memref<8x8x256xf32, #tpu.memory_space<vmem>>, vector<1x8x256xf32>
    %14 = vector.shape_cast %13 : vector<1x8x256xf32> to vector<8x256xf32>
    %15 = vector.extract_strided_slice %14 {offsets = [0, 0], sizes = [8, 128], strides = [1, 1]} : vector<8x256xf32> to vector<8x128xf32>
    %16 = arith.negf %15 : vector<8x128xf32>
    %17 = math.exp %16 : vector<8x128xf32>
    %cst_12 = arith.constant 1.000000e+00 : f32
    %18 = vector.broadcast %cst_12 : f32 to vector<8x128xf32>
    %19 = arith.addf %18, %17 : vector<8x128xf32>
    %20 = arith.divf %18, %19 : vector<8x128xf32>
    %21 = vector.extract_strided_slice %14 {offsets = [0, 128], sizes = [8, 128], strides = [1, 1]} : vector<8x256xf32> to vector<8x128xf32>
    %22 = math.tanh %21 : vector<8x128xf32>
    %23 = arith.negf %21 : vector<8x128xf32>
    %24 = math.exp %23 : vector<8x128xf32>
    %cst_13 = arith.constant 1.000000e+00 : f32
    %25 = vector.broadcast %cst_13 : f32 to vector<8x128xf32>
    %26 = arith.addf %25, %24 : vector<8x128xf32>
    %27 = arith.divf %25, %26 : vector<8x128xf32>
    %28 = vector.extract_strided_slice %20 {offsets = [0, 0], sizes = [8, 64], strides = [1, 1]} : vector<8x128xf32> to vector<8x64xf32>
    %29 = vector.extract_strided_slice %20 {offsets = [0, 64], sizes = [8, 64], strides = [1, 1]} : vector<8x128xf32> to vector<8x64xf32>
    %30 = vector.extract_strided_slice %22 {offsets = [0, 0], sizes = [8, 64], strides = [1, 1]} : vector<8x128xf32> to vector<8x64xf32>
    %31 = vector.extract_strided_slice %27 {offsets = [0, 64], sizes = [8, 64], strides = [1, 1]} : vector<8x128xf32> to vector<8x64xf32>
    %32 = arith.mulf %29, %12 : vector<8x64xf32>
    %33 = arith.mulf %28, %30 : vector<8x64xf32>
    %34 = arith.addf %32, %33 : vector<8x64xf32>
    %35 = math.tanh %34 : vector<8x64xf32>
    %36 = arith.mulf %31, %35 : vector<8x64xf32>
    %c32_i32 = arith.constant 32 : i32
    %37 = vector.broadcast %c32_i32 : i32 to vector<1x64xi32>
    %38 = arith.cmpi slt, %11, %37 : vector<1x64xi32>
    %cst_14 = arith.constant 0.000000e+00 : f32
    %39 = vector.shape_cast %38 : vector<1x64xi1> to vector<1x64xi1>
    %40 = vector.broadcast %39 : vector<1x64xi1> to vector<8x64xi1>
    %41 = vector.broadcast %cst_14 : f32 to vector<8x64xf32>
    %42 = arith.select %40, %36, %41 : vector<8x64xi1>, vector<8x64xf32>
    %c32_i32_15 = arith.constant 32 : i32
    %43 = vector.broadcast %c32_i32_15 : i32 to vector<1x64xi32>
    %44 = arith.cmpi slt, %11, %43 : vector<1x64xi32>
    %cst_16 = arith.constant 0.000000e+00 : f32
    %45 = vector.shape_cast %44 : vector<1x64xi1> to vector<1x64xi1>
    %46 = vector.broadcast %45 : vector<1x64xi1> to vector<8x64xi1>
    %47 = vector.broadcast %cst_16 : f32 to vector<8x64xf32>
    %48 = arith.select %46, %34, %47 : vector<8x64xi1>, vector<8x64xf32>
    %c0_17 = arith.constant 0 : index
    %c0_18 = arith.constant 0 : index
    %49 = vector.load %arg3[%c0_17, %c0_18] : memref<64x256xf32, #tpu.memory_space<vmem>>, vector<64x256xf32>
    %cst_19 = arith.constant dense<0.000000e+00> : vector<8x256xf32>
    %50 = tpu.matmul %42, %49, %cst_19 {dimension_numbers = #tpu.dot_dimension_numbers<[1], [0], [0], [1], [0, 0, 1, 1], [], []>} : vector<8x64xf32>, vector<64x256xf32>, vector<8x256xf32> -> vector<8x256xf32>
    %c1 = arith.constant 1 : index
    %c0_20 = arith.constant 0 : index
    %c0_21 = arith.constant 0 : index
    %51 = vector.load %arg9[%c1, %c0_20, %c0_21] : memref<8x8x256xf32, #tpu.memory_space<vmem>>, vector<1x8x256xf32>
    %52 = vector.shape_cast %51 : vector<1x8x256xf32> to vector<8x256xf32>
    %53 = arith.addf %50, %52 : vector<8x256xf32>
    %54 = vector.extract_strided_slice %53 {offsets = [0, 0], sizes = [8, 128], strides = [1, 1]} : vector<8x256xf32> to vector<8x128xf32>
    %55 = arith.negf %54 : vector<8x128xf32>
    %56 = math.exp %55 : vector<8x128xf32>
    %cst_22 = arith.constant 1.000000e+00 : f32
    %57 = vector.broadcast %cst_22 : f32 to vector<8x128xf32>
    %58 = arith.addf %57, %56 : vector<8x128xf32>
    %59 = arith.divf %57, %58 : vector<8x128xf32>
    %60 = vector.extract_strided_slice %53 {offsets = [0, 128], sizes = [8, 128], strides = [1, 1]} : vector<8x256xf32> to vector<8x128xf32>
    %61 = math.tanh %60 : vector<8x128xf32>
    %62 = arith.negf %60 : vector<8x128xf32>
    %63 = math.exp %62 : vector<8x128xf32>
    %cst_23 = arith.constant 1.000000e+00 : f32
    %64 = vector.broadcast %cst_23 : f32 to vector<8x128xf32>
    %65 = arith.addf %64, %63 : vector<8x128xf32>
    %66 = arith.divf %64, %65 : vector<8x128xf32>
    %67 = vector.extract_strided_slice %59 {offsets = [0, 0], sizes = [8, 64], strides = [1, 1]} : vector<8x128xf32> to vector<8x64xf32>
    %68 = vector.extract_strided_slice %59 {offsets = [0, 64], sizes = [8, 64], strides = [1, 1]} : vector<8x128xf32> to vector<8x64xf32>
    %69 = vector.extract_strided_slice %61 {offsets = [0, 0], sizes = [8, 64], strides = [1, 1]} : vector<8x128xf32> to vector<8x64xf32>
    %70 = vector.extract_strided_slice %66 {offsets = [0, 64], sizes = [8, 64], strides = [1, 1]} : vector<8x128xf32> to vector<8x64xf32>
    %71 = arith.mulf %68, %48 : vector<8x64xf32>
    %72 = arith.mulf %67, %69 : vector<8x64xf32>
    %73 = arith.addf %71, %72 : vector<8x64xf32>
    %74 = math.tanh %73 : vector<8x64xf32>
    %75 = arith.mulf %70, %74 : vector<8x64xf32>
    %c0_24 = arith.constant 0 : index
    %c0_25 = arith.constant 0 : index
    %76 = vector.load %arg3[%c0_24, %c0_25] : memref<64x256xf32, #tpu.memory_space<vmem>>, vector<64x256xf32>
    %cst_26 = arith.constant dense<0.000000e+00> : vector<8x256xf32>
    %77 = tpu.matmul %75, %76, %cst_26 {dimension_numbers = #tpu.dot_dimension_numbers<[1], [0], [0], [1], [0, 0, 1, 1], [], []>} : vector<8x64xf32>, vector<64x256xf32>, vector<8x256xf32> -> vector<8x256xf32>
    %c2 = arith.constant 2 : index
    %c0_27 = arith.constant 0 : index
    %c0_28 = arith.constant 0 : index
    %78 = vector.load %arg9[%c2, %c0_27, %c0_28] : memref<8x8x256xf32, #tpu.memory_space<vmem>>, vector<1x8x256xf32>
    %79 = vector.shape_cast %78 : vector<1x8x256xf32> to vector<8x256xf32>
    %80 = arith.addf %77, %79 : vector<8x256xf32>
    %81 = vector.extract_strided_slice %80 {offsets = [0, 0], sizes = [8, 128], strides = [1, 1]} : vector<8x256xf32> to vector<8x128xf32>
    %82 = arith.negf %81 : vector<8x128xf32>
    %83 = math.exp %82 : vector<8x128xf32>
    %cst_29 = arith.constant 1.000000e+00 : f32
    %84 = vector.broadcast %cst_29 : f32 to vector<8x128xf32>
    %85 = arith.addf %84, %83 : vector<8x128xf32>
    %86 = arith.divf %84, %85 : vector<8x128xf32>
    %87 = vector.extract_strided_slice %80 {offsets = [0, 128], sizes = [8, 128], strides = [1, 1]} : vector<8x256xf32> to vector<8x128xf32>
    %88 = math.tanh %87 : vector<8x128xf32>
    %89 = arith.negf %87 : vector<8x128xf32>
    %90 = math.exp %89 : vector<8x128xf32>
    %cst_30 = arith.constant 1.000000e+00 : f32
    %91 = vector.broadcast %cst_30 : f32 to vector<8x128xf32>
    %92 = arith.addf %91, %90 : vector<8x128xf32>
    %93 = arith.divf %91, %92 : vector<8x128xf32>
    %94 = vector.extract_strided_slice %86 {offsets = [0, 0], sizes = [8, 64], strides = [1, 1]} : vector<8x128xf32> to vector<8x64xf32>
    %95 = vector.extract_strided_slice %86 {offsets = [0, 64], sizes = [8, 64], strides = [1, 1]} : vector<8x128xf32> to vector<8x64xf32>
    %96 = vector.extract_strided_slice %88 {offsets = [0, 0], sizes = [8, 64], strides = [1, 1]} : vector<8x128xf32> to vector<8x64xf32>
    %97 = vector.extract_strided_slice %93 {offsets = [0, 64], sizes = [8, 64], strides = [1, 1]} : vector<8x128xf32> to vector<8x64xf32>
    %98 = arith.mulf %95, %73 : vector<8x64xf32>
    %99 = arith.mulf %94, %96 : vector<8x64xf32>
    %100 = arith.addf %98, %99 : vector<8x64xf32>
    %101 = math.tanh %100 : vector<8x64xf32>
    %102 = arith.mulf %97, %101 : vector<8x64xf32>
    %c0_31 = arith.constant 0 : index
    %c0_32 = arith.constant 0 : index
    %103 = vector.load %arg3[%c0_31, %c0_32] : memref<64x256xf32, #tpu.memory_space<vmem>>, vector<64x256xf32>
    %cst_33 = arith.constant dense<0.000000e+00> : vector<8x256xf32>
    %104 = tpu.matmul %102, %103, %cst_33 {dimension_numbers = #tpu.dot_dimension_numbers<[1], [0], [0], [1], [0, 0, 1, 1], [], []>} : vector<8x64xf32>, vector<64x256xf32>, vector<8x256xf32> -> vector<8x256xf32>
    %c3 = arith.constant 3 : index
    %c0_34 = arith.constant 0 : index
    %c0_35 = arith.constant 0 : index
    %105 = vector.load %arg9[%c3, %c0_34, %c0_35] : memref<8x8x256xf32, #tpu.memory_space<vmem>>, vector<1x8x256xf32>
    %106 = vector.shape_cast %105 : vector<1x8x256xf32> to vector<8x256xf32>
    %107 = arith.addf %104, %106 : vector<8x256xf32>
    %108 = vector.extract_strided_slice %107 {offsets = [0, 0], sizes = [8, 128], strides = [1, 1]} : vector<8x256xf32> to vector<8x128xf32>
    %109 = arith.negf %108 : vector<8x128xf32>
    %110 = math.exp %109 : vector<8x128xf32>
    %cst_36 = arith.constant 1.000000e+00 : f32
    %111 = vector.broadcast %cst_36 : f32 to vector<8x128xf32>
    %112 = arith.addf %111, %110 : vector<8x128xf32>
    %113 = arith.divf %111, %112 : vector<8x128xf32>
    %114 = vector.extract_strided_slice %107 {offsets = [0, 128], sizes = [8, 128], strides = [1, 1]} : vector<8x256xf32> to vector<8x128xf32>
    %115 = math.tanh %114 : vector<8x128xf32>
    %116 = arith.negf %114 : vector<8x128xf32>
    %117 = math.exp %116 : vector<8x128xf32>
    %cst_37 = arith.constant 1.000000e+00 : f32
    %118 = vector.broadcast %cst_37 : f32 to vector<8x128xf32>
    %119 = arith.addf %118, %117 : vector<8x128xf32>
    %120 = arith.divf %118, %119 : vector<8x128xf32>
    %121 = vector.extract_strided_slice %113 {offsets = [0, 0], sizes = [8, 64], strides = [1, 1]} : vector<8x128xf32> to vector<8x64xf32>
    %122 = vector.extract_strided_slice %113 {offsets = [0, 64], sizes = [8, 64], strides = [1, 1]} : vector<8x128xf32> to vector<8x64xf32>
    %123 = vector.extract_strided_slice %115 {offsets = [0, 0], sizes = [8, 64], strides = [1, 1]} : vector<8x128xf32> to vector<8x64xf32>
    %124 = vector.extract_strided_slice %120 {offsets = [0, 64], sizes = [8, 64], strides = [1, 1]} : vector<8x128xf32> to vector<8x64xf32>
    %125 = arith.mulf %122, %100 : vector<8x64xf32>
    %126 = arith.mulf %121, %123 : vector<8x64xf32>
    %127 = arith.addf %125, %126 : vector<8x64xf32>
    %128 = math.tanh %127 : vector<8x64xf32>
    %129 = arith.mulf %124, %128 : vector<8x64xf32>
    %c0_38 = arith.constant 0 : index
    %c0_39 = arith.constant 0 : index
    %130 = vector.load %arg3[%c0_38, %c0_39] : memref<64x256xf32, #tpu.memory_space<vmem>>, vector<64x256xf32>
    %cst_40 = arith.constant dense<0.000000e+00> : vector<8x256xf32>
    %131 = tpu.matmul %129, %130, %cst_40 {dimension_numbers = #tpu.dot_dimension_numbers<[1], [0], [0], [1], [0, 0, 1, 1], [], []>} : vector<8x64xf32>, vector<64x256xf32>, vector<8x256xf32> -> vector<8x256xf32>
    %c4 = arith.constant 4 : index
    %c0_41 = arith.constant 0 : index
    %c0_42 = arith.constant 0 : index
    %132 = vector.load %arg9[%c4, %c0_41, %c0_42] : memref<8x8x256xf32, #tpu.memory_space<vmem>>, vector<1x8x256xf32>
    %133 = vector.shape_cast %132 : vector<1x8x256xf32> to vector<8x256xf32>
    %134 = arith.addf %131, %133 : vector<8x256xf32>
    %135 = vector.extract_strided_slice %134 {offsets = [0, 0], sizes = [8, 128], strides = [1, 1]} : vector<8x256xf32> to vector<8x128xf32>
    %136 = arith.negf %135 : vector<8x128xf32>
    %137 = math.exp %136 : vector<8x128xf32>
    %cst_43 = arith.constant 1.000000e+00 : f32
    %138 = vector.broadcast %cst_43 : f32 to vector<8x128xf32>
    %139 = arith.addf %138, %137 : vector<8x128xf32>
    %140 = arith.divf %138, %139 : vector<8x128xf32>
    %141 = vector.extract_strided_slice %134 {offsets = [0, 128], sizes = [8, 128], strides = [1, 1]} : vector<8x256xf32> to vector<8x128xf32>
    %142 = math.tanh %141 : vector<8x128xf32>
    %143 = arith.negf %141 : vector<8x128xf32>
    %144 = math.exp %143 : vector<8x128xf32>
    %cst_44 = arith.constant 1.000000e+00 : f32
    %145 = vector.broadcast %cst_44 : f32 to vector<8x128xf32>
    %146 = arith.addf %145, %144 : vector<8x128xf32>
    %147 = arith.divf %145, %146 : vector<8x128xf32>
    %148 = vector.extract_strided_slice %140 {offsets = [0, 0], sizes = [8, 64], strides = [1, 1]} : vector<8x128xf32> to vector<8x64xf32>
    %149 = vector.extract_strided_slice %140 {offsets = [0, 64], sizes = [8, 64], strides = [1, 1]} : vector<8x128xf32> to vector<8x64xf32>
    %150 = vector.extract_strided_slice %142 {offsets = [0, 0], sizes = [8, 64], strides = [1, 1]} : vector<8x128xf32> to vector<8x64xf32>
    %151 = vector.extract_strided_slice %147 {offsets = [0, 64], sizes = [8, 64], strides = [1, 1]} : vector<8x128xf32> to vector<8x64xf32>
    %152 = arith.mulf %149, %127 : vector<8x64xf32>
    %153 = arith.mulf %148, %150 : vector<8x64xf32>
    %154 = arith.addf %152, %153 : vector<8x64xf32>
    %155 = math.tanh %154 : vector<8x64xf32>
    %156 = arith.mulf %151, %155 : vector<8x64xf32>
    %c0_45 = arith.constant 0 : index
    %c0_46 = arith.constant 0 : index
    %157 = vector.load %arg3[%c0_45, %c0_46] : memref<64x256xf32, #tpu.memory_space<vmem>>, vector<64x256xf32>
    %cst_47 = arith.constant dense<0.000000e+00> : vector<8x256xf32>
    %158 = tpu.matmul %156, %157, %cst_47 {dimension_numbers = #tpu.dot_dimension_numbers<[1], [0], [0], [1], [0, 0, 1, 1], [], []>} : vector<8x64xf32>, vector<64x256xf32>, vector<8x256xf32> -> vector<8x256xf32>
    %c5 = arith.constant 5 : index
    %c0_48 = arith.constant 0 : index
    %c0_49 = arith.constant 0 : index
    %159 = vector.load %arg9[%c5, %c0_48, %c0_49] : memref<8x8x256xf32, #tpu.memory_space<vmem>>, vector<1x8x256xf32>
    %160 = vector.shape_cast %159 : vector<1x8x256xf32> to vector<8x256xf32>
    %161 = arith.addf %158, %160 : vector<8x256xf32>
    %162 = vector.extract_strided_slice %161 {offsets = [0, 0], sizes = [8, 128], strides = [1, 1]} : vector<8x256xf32> to vector<8x128xf32>
    %163 = arith.negf %162 : vector<8x128xf32>
    %164 = math.exp %163 : vector<8x128xf32>
    %cst_50 = arith.constant 1.000000e+00 : f32
    %165 = vector.broadcast %cst_50 : f32 to vector<8x128xf32>
    %166 = arith.addf %165, %164 : vector<8x128xf32>
    %167 = arith.divf %165, %166 : vector<8x128xf32>
    %168 = vector.extract_strided_slice %161 {offsets = [0, 128], sizes = [8, 128], strides = [1, 1]} : vector<8x256xf32> to vector<8x128xf32>
    %169 = math.tanh %168 : vector<8x128xf32>
    %170 = arith.negf %168 : vector<8x128xf32>
    %171 = math.exp %170 : vector<8x128xf32>
    %cst_51 = arith.constant 1.000000e+00 : f32
    %172 = vector.broadcast %cst_51 : f32 to vector<8x128xf32>
    %173 = arith.addf %172, %171 : vector<8x128xf32>
    %174 = arith.divf %172, %173 : vector<8x128xf32>
    %175 = vector.extract_strided_slice %167 {offsets = [0, 0], sizes = [8, 64], strides = [1, 1]} : vector<8x128xf32> to vector<8x64xf32>
    %176 = vector.extract_strided_slice %167 {offsets = [0, 64], sizes = [8, 64], strides = [1, 1]} : vector<8x128xf32> to vector<8x64xf32>
    %177 = vector.extract_strided_slice %169 {offsets = [0, 0], sizes = [8, 64], strides = [1, 1]} : vector<8x128xf32> to vector<8x64xf32>
    %178 = vector.extract_strided_slice %174 {offsets = [0, 64], sizes = [8, 64], strides = [1, 1]} : vector<8x128xf32> to vector<8x64xf32>
    %179 = arith.mulf %176, %154 : vector<8x64xf32>
    %180 = arith.mulf %175, %177 : vector<8x64xf32>
    %181 = arith.addf %179, %180 : vector<8x64xf32>
    %182 = math.tanh %181 : vector<8x64xf32>
    %183 = arith.mulf %178, %182 : vector<8x64xf32>
    %c0_52 = arith.constant 0 : index
    %c0_53 = arith.constant 0 : index
    %184 = vector.load %arg3[%c0_52, %c0_53] : memref<64x256xf32, #tpu.memory_space<vmem>>, vector<64x256xf32>
    %cst_54 = arith.constant dense<0.000000e+00> : vector<8x256xf32>
    %185 = tpu.matmul %183, %184, %cst_54 {dimension_numbers = #tpu.dot_dimension_numbers<[1], [0], [0], [1], [0, 0, 1, 1], [], []>} : vector<8x64xf32>, vector<64x256xf32>, vector<8x256xf32> -> vector<8x256xf32>
    %c6 = arith.constant 6 : index
    %c0_55 = arith.constant 0 : index
    %c0_56 = arith.constant 0 : index
    %186 = vector.load %arg9[%c6, %c0_55, %c0_56] : memref<8x8x256xf32, #tpu.memory_space<vmem>>, vector<1x8x256xf32>
    %187 = vector.shape_cast %186 : vector<1x8x256xf32> to vector<8x256xf32>
    %188 = arith.addf %185, %187 : vector<8x256xf32>
    %189 = vector.extract_strided_slice %188 {offsets = [0, 0], sizes = [8, 128], strides = [1, 1]} : vector<8x256xf32> to vector<8x128xf32>
    %190 = arith.negf %189 : vector<8x128xf32>
    %191 = math.exp %190 : vector<8x128xf32>
    %cst_57 = arith.constant 1.000000e+00 : f32
    %192 = vector.broadcast %cst_57 : f32 to vector<8x128xf32>
    %193 = arith.addf %192, %191 : vector<8x128xf32>
    %194 = arith.divf %192, %193 : vector<8x128xf32>
    %195 = vector.extract_strided_slice %188 {offsets = [0, 128], sizes = [8, 128], strides = [1, 1]} : vector<8x256xf32> to vector<8x128xf32>
    %196 = math.tanh %195 : vector<8x128xf32>
    %197 = arith.negf %195 : vector<8x128xf32>
    %198 = math.exp %197 : vector<8x128xf32>
    %cst_58 = arith.constant 1.000000e+00 : f32
    %199 = vector.broadcast %cst_58 : f32 to vector<8x128xf32>
    %200 = arith.addf %199, %198 : vector<8x128xf32>
    %201 = arith.divf %199, %200 : vector<8x128xf32>
    %202 = vector.extract_strided_slice %194 {offsets = [0, 0], sizes = [8, 64], strides = [1, 1]} : vector<8x128xf32> to vector<8x64xf32>
    %203 = vector.extract_strided_slice %194 {offsets = [0, 64], sizes = [8, 64], strides = [1, 1]} : vector<8x128xf32> to vector<8x64xf32>
    %204 = vector.extract_strided_slice %196 {offsets = [0, 0], sizes = [8, 64], strides = [1, 1]} : vector<8x128xf32> to vector<8x64xf32>
    %205 = vector.extract_strided_slice %201 {offsets = [0, 64], sizes = [8, 64], strides = [1, 1]} : vector<8x128xf32> to vector<8x64xf32>
    %206 = arith.mulf %203, %181 : vector<8x64xf32>
    %207 = arith.mulf %202, %204 : vector<8x64xf32>
    %208 = arith.addf %206, %207 : vector<8x64xf32>
    %209 = math.tanh %208 : vector<8x64xf32>
    %210 = arith.mulf %205, %209 : vector<8x64xf32>
    %c0_59 = arith.constant 0 : index
    %c0_60 = arith.constant 0 : index
    %211 = vector.load %arg3[%c0_59, %c0_60] : memref<64x256xf32, #tpu.memory_space<vmem>>, vector<64x256xf32>
    %cst_61 = arith.constant dense<0.000000e+00> : vector<8x256xf32>
    %212 = tpu.matmul %210, %211, %cst_61 {dimension_numbers = #tpu.dot_dimension_numbers<[1], [0], [0], [1], [0, 0, 1, 1], [], []>} : vector<8x64xf32>, vector<64x256xf32>, vector<8x256xf32> -> vector<8x256xf32>
    %c7 = arith.constant 7 : index
    %c0_62 = arith.constant 0 : index
    %c0_63 = arith.constant 0 : index
    %213 = vector.load %arg9[%c7, %c0_62, %c0_63] : memref<8x8x256xf32, #tpu.memory_space<vmem>>, vector<1x8x256xf32>
    %214 = vector.shape_cast %213 : vector<1x8x256xf32> to vector<8x256xf32>
    %215 = arith.addf %212, %214 : vector<8x256xf32>
    %216 = vector.extract_strided_slice %215 {offsets = [0, 0], sizes = [8, 128], strides = [1, 1]} : vector<8x256xf32> to vector<8x128xf32>
    %217 = arith.negf %216 : vector<8x128xf32>
    %218 = math.exp %217 : vector<8x128xf32>
    %cst_64 = arith.constant 1.000000e+00 : f32
    %219 = vector.broadcast %cst_64 : f32 to vector<8x128xf32>
    %220 = arith.addf %219, %218 : vector<8x128xf32>
    %221 = arith.divf %219, %220 : vector<8x128xf32>
    %222 = vector.extract_strided_slice %215 {offsets = [0, 128], sizes = [8, 128], strides = [1, 1]} : vector<8x256xf32> to vector<8x128xf32>
    %223 = math.tanh %222 : vector<8x128xf32>
    %224 = arith.negf %222 : vector<8x128xf32>
    %225 = math.exp %224 : vector<8x128xf32>
    %cst_65 = arith.constant 1.000000e+00 : f32
    %226 = vector.broadcast %cst_65 : f32 to vector<8x128xf32>
    %227 = arith.addf %226, %225 : vector<8x128xf32>
    %228 = arith.divf %226, %227 : vector<8x128xf32>
    %229 = vector.extract_strided_slice %221 {offsets = [0, 0], sizes = [8, 64], strides = [1, 1]} : vector<8x128xf32> to vector<8x64xf32>
    %230 = vector.extract_strided_slice %221 {offsets = [0, 64], sizes = [8, 64], strides = [1, 1]} : vector<8x128xf32> to vector<8x64xf32>
    %231 = vector.extract_strided_slice %223 {offsets = [0, 0], sizes = [8, 64], strides = [1, 1]} : vector<8x128xf32> to vector<8x64xf32>
    %232 = vector.extract_strided_slice %228 {offsets = [0, 64], sizes = [8, 64], strides = [1, 1]} : vector<8x128xf32> to vector<8x64xf32>
    %233 = arith.mulf %230, %208 : vector<8x64xf32>
    %234 = arith.mulf %229, %231 : vector<8x64xf32>
    %235 = arith.addf %233, %234 : vector<8x64xf32>
    %236 = math.tanh %235 : vector<8x64xf32>
    %237 = arith.mulf %232, %236 : vector<8x64xf32>
    %c0_66 = arith.constant 0 : index
    %c0_67 = arith.constant 0 : index
    %238 = vector.load %arg4[%c0_66, %c0_67] : memref<64x128xf32, #tpu.memory_space<vmem>>, vector<64x128xf32>
    %cst_68 = arith.constant dense<0.000000e+00> : vector<8x128xf32>
    %239 = tpu.matmul %237, %238, %cst_68 {dimension_numbers = #tpu.dot_dimension_numbers<[1], [0], [0], [1], [0, 0, 1, 1], [], []>} : vector<8x64xf32>, vector<64x128xf32>, vector<8x128xf32> -> vector<8x128xf32>
    %c0_69 = arith.constant 0 : index
    %c0_70 = arith.constant 0 : index
    %240 = vector.load %arg5[%c0_69, %c0_70] : memref<1x128xf32, #tpu.memory_space<vmem>>, vector<1x128xf32>
    %241 = vector.broadcast %240 : vector<1x128xf32> to vector<8x128xf32>
    %242 = arith.addf %239, %241 : vector<8x128xf32>
    %243 = arith.negf %242 : vector<8x128xf32>
    %244 = math.exp %243 : vector<8x128xf32>
    %cst_71 = arith.constant 1.000000e+00 : f32
    %245 = vector.broadcast %cst_71 : f32 to vector<8x128xf32>
    %246 = arith.addf %245, %244 : vector<8x128xf32>
    %247 = arith.divf %245, %246 : vector<8x128xf32>
    %248 = math.tanh %242 : vector<8x128xf32>
    %249 = vector.extract_strided_slice %247 {offsets = [0, 0], sizes = [8, 32], strides = [1, 1]} : vector<8x128xf32> to vector<8x32xf32>
    %250 = vector.extract_strided_slice %247 {offsets = [0, 32], sizes = [8, 32], strides = [1, 1]} : vector<8x128xf32> to vector<8x32xf32>
    %251 = vector.extract_strided_slice %248 {offsets = [0, 64], sizes = [8, 32], strides = [1, 1]} : vector<8x128xf32> to vector<8x32xf32>
    %252 = vector.extract_strided_slice %247 {offsets = [0, 96], sizes = [8, 32], strides = [1, 1]} : vector<8x128xf32> to vector<8x32xf32>
    %253 = vector.extract_strided_slice %235 {offsets = [0, 32], sizes = [8, 32], strides = [1, 1]} : vector<8x64xf32> to vector<8x32xf32>
    %254 = arith.mulf %250, %253 : vector<8x32xf32>
    %255 = arith.mulf %249, %251 : vector<8x32xf32>
    %256 = arith.addf %254, %255 : vector<8x32xf32>
    %257 = math.tanh %256 : vector<8x32xf32>
    %258 = arith.mulf %252, %257 : vector<8x32xf32>
    %c0_72 = arith.constant 0 : index
    %c0_73 = arith.constant 0 : index
    %259 = vector.load %arg6[%c0_72, %c0_73] : memref<1x32xf32, #tpu.memory_space<vmem>>, vector<1x32xf32>
    %260 = vector.broadcast %259 : vector<1x32xf32> to vector<8x32xf32>
    %261 = arith.mulf %258, %260 : vector<8x32xf32>
    %cst_74 = arith.constant dense<0.000000e+00> : vector<8xf32>
    %262 = vector.multi_reduction <add>, %261, %cst_74 [1] : vector<8x32xf32> to vector<8xf32>
    %263 = vector.shape_cast %262 : vector<8xf32> to vector<8x1xf32>
    %c0_75 = arith.constant 0 : index
    %c0_76 = arith.constant 0 : index
    %264 = vector.load %arg7[%c0_75, %c0_76] : memref<1x1xf32, #tpu.memory_space<vmem>>, vector<1x1xf32>
    %265 = vector.broadcast %264 : vector<1x1xf32> to vector<8x1xf32>
    %266 = arith.addf %263, %265 : vector<8x1xf32>
    %c0_77 = arith.constant 0 : index
    %c0_78 = arith.constant 0 : index
    %267 = vector.load %arg8[%c0_77, %c0_78] : memref<8x1xf32, #tpu.memory_space<vmem>>, vector<8x1xf32>
    tpu.vector_store %arg8[%c0_77, %c0_78], %266 {strides = array<i32>} : memref<8x1xf32, #tpu.memory_space<vmem>>, vector<8x1xf32>,
    return
  }
}

</mosaic_0001>

<bundles_post_ra>
// kernel: lstm_forward.1
= control target key start
LH: loop header
LB: loop body
LE: loop exit
PB: predicated region body
PF: predicated region fallthrough
CT: control target
= control target key end

     0   :  { %v1359_v0 = vmov 0   ;;  %v81_v2 = vlaneseq  ;;  %v1361_v53 = vmov 0.0   ;;  %vm209_vm1 = vcmask 523264   ;;  %s1364_s24 = smov 32   ;;  %s1676_s0 = inlined_call_operand.vmem [shape: f32[8,8,1], index: 0, kind: input, shape index: {}]   ;;  %s1677_s1 = inlined_call_operand.vmem [shape: f32[1,256], index: 1, kind: input, shape index: {}]   ;;  %s1678_s2 = inlined_call_operand.vmem [shape: f32[1,256], index: 2, kind: input, shape index: {}]   ;;  %s1679_s3 = inlined_call_operand.vmem [shape: f32[64,256], index: 3, kind: input, shape index: {}]   ;;  %s1680_s4 = inlined_call_operand.vmem [shape: f32[64,128], index: 4, kind: input, shape index: {}]   ;;  %s1681_s5 = inlined_call_operand.vmem [shape: f32[1,128], index: 5, kind: input, shape index: {}]   ;;  %s1682_s6 = inlined_call_operand.vmem [shape: f32[1,32], index: 6, kind: input, shape index: {}]   ;;  %s1683_s7 = inlined_call_operand.<no memory space> [shape: f32[1,1], index: 7, kind: input, shape index: {}]   ;;  %s1684_s8 = inlined_call_operand.vmem [shape: f32[8,1], index: 8, kind: output, shape index: {}]  }
   0x1   :  { %1253 = vset.pattern.permute.xlu0 %v1359_v0  ;;  %v31_v1 = vld [vmem:[%s1676_s0] sm:$0xff]  ;;  %1254 = vset.pattern.permute.xlu1 %v1359_v0  ;;  %v191_v23 = vld [vmem:[%s1679_s3 + $0x8] sm:$0xff]  ;;  %v193_v24 = vld [vmem:[%s1679_s3 + $0x18] sm:$0xff]  ;;  %vm1363_vm2 = vmmov 0   ;;  %vm1048_vm3 = vcmask 261120   ;;  %vm1060_vm4 = vcmask 7168  }
   0x2   :  { %42 = vperm.xlu0 %1253, %v31_v1   ;;  %v82_v3 = vshrl.u32 %v81_v2, 7  ;;  %v39_v5 = vld [vmem:[%s1677_s1] sm:$0x3]  ;;  %s1360_s1 = smov 64   ;;  %v1443_v26 = vpack.c.bf16 %v193_v24, %v191_v23  ;;  %v192_v27 = vld [vmem:[%s1679_s3 + $0x10] sm:$0xff]  ;;  %v195_v30 = vld [vmem:[%s1679_s3 + $0x28] sm:$0xff]  ;;  %277 = vmatprep.mubr.f32.mxu0 %v1361_v53 }
   0x3   :  { %v107_v6 = vld [vmem:[%s1678_s2] sm:$0x3]  ;;  %v197_v31 = vld [vmem:[%s1679_s3 + $0x38] sm:$0xff]  ;;  %v196_v34 = vld [vmem:[%s1679_s3 + $0x30] sm:$0xff]  ;;  %382 = vmatprep.mubr.f32.mxu1 %v1361_v53  ;;  %v152_v58 = vand.u32 127, %v81_v2 }
   0x4   :  { %v83_v4 = vsub.s32 0, %v82_v3  ;;  %v87_v11 = vsub.s32 1, %v82_v3  ;;  %v190_v25 = vld [vmem:[%s1679_s3] sm:$0xff]  ;;  %1123 = vmatprep.subr.bf16.mxu0 %v1443_v26  ;;  %1139 = vmatprep.subr.bf16.mxu1 %v1443_v26  ;;  %v1460_v32 = vpack.c.bf16 %v197_v31, %v195_v30  ;;  %v199_v35 = vld [vmem:[%s1679_s3 + $0x48] sm:$0xff]  ;;  %v201_v37 = vld [vmem:[%s1679_s3 + $0x58] sm:$0xff] }
   0x5   :  { %v1448_v28 = vpack.c.bf16 %v192_v27, %v190_v25  ;;  %v194_v33 = vld [vmem:[%s1679_s3 + $0x20] sm:$0xff]  ;;  %v200_v39 = vld [vmem:[%s1679_s3 + $0x50] sm:$0xff]  ;;  %v1483_v40 = vpack.c.bf16 %v201_v37, %v199_v35  ;;  %v203_v41 = vld [vmem:[%s1679_s3 + $0x68] sm:$0xff]  ;;  %vm177_vm0 = vcmp.lt.s32.totalorder %v152_v58, 32 }
   0x6   :  { %v1421_v7 = vrot.slane %v39_v5, %v83_v4  ;;  %v1423_v8 = vrot.slane %v107_v6, %v83_v4  ;;  %v1427_v14 = vrot.slane %v39_v5, %v87_v11  ;;  %v1429_v15 = vrot.slane %v107_v6, %v87_v11  ;;  %v198_v38 = vld [vmem:[%s1679_s3 + $0x40] sm:$0xff]  ;;  %v205_v42 = vld [vmem:[%s1679_s3 + $0x78] sm:$0xff]  ;;  %v204_v47 = vld [vmem:[%s1679_s3 + $0x70] sm:$0xff] }
   0x7   :  { %1125 = vmatpush1.bf16.msra.mxu0 %v1448_v28  ;;  %1141 = vmatpush1.bf16.msra.mxu1 %v1448_v28  ;;  %v1471_v36 = vpack.c.bf16 %v196_v34, %v194_v33  ;;  %v1493_v43 = vpack.c.bf16 %v200_v39, %v198_v38  ;;  %v1497_v45 = vpack.c.bf16 %v205_v42, %v203_v41  ;;  %v202_v46 = vld [vmem:[%s1679_s3 + $0x60] sm:$0xff]  ;;  %v32_v57 = vld [vmem:[%s1676_s0 + $0x8] sm:$0xff] }
   0x8   :  { %1127 = vmatprep.subr.bf16.mxu0 %v1460_v32  ;;  %1143 = vmatprep.subr.bf16.mxu1 %v1460_v32  ;;  %v1507_v49 = vpack.c.bf16 %v204_v47, %v202_v46 }
   0xb   :  { %1129 = vmatpush1.bf16.msra.mxu0 %v1471_v36  ;;  %1145 = vmatpush1.bf16.msra.mxu1 %v1471_v36 }
   0xc   :  { %1131 = vmatprep.subr.bf16.mxu0 %v1483_v40  ;;  %1147 = vmatprep.subr.bf16.mxu1 %v1483_v40 }
   0xf   :  { %1133 = vmatpush1.bf16.msra.mxu0 %v1493_v43  ;;  %1149 = vmatpush1.bf16.msra.mxu1 %v1493_v43 }
  0x10   :  { %1135 = vmatprep.subr.bf16.mxu0 %v1497_v45  ;;  %1151 = vmatprep.subr.bf16.mxu1 %v1497_v45 }
  0x13   :  { %1137 = vmatpush1.bf16.msra.mxu0 %v1507_v49  ;;  %1153 = vmatpush1.bf16.msra.mxu1 %v1507_v49 }
  0x14   :  { %1155 = vmatprep.subr.bf16.mxu0 %v1443_v26  ;;  %1171 = vmatprep.subr.bf16.mxu1 %v1443_v26 }
  0x81   :  { %v43_v9 = vpop.permute.xlu0 %42 }
  0x82   :  { %v91_v10 = vmul.f32 %v1421_v7, %v43_v9  ;;  %v92_v16 = vmul.f32 %v1427_v14, %v43_v9 }
  0x84   :  { %v119_v12 = vadd.f32 %v1423_v8, %v91_v10  ;;  %v120_v17 = vadd.f32 %v1429_v15, %v92_v16 }
  0x86   :  { %v1066_v13 = vmul.f32 -1.442695, %v119_v12  ;;  %v1067_v29 = vmul.f32 -1.442695, %v120_v17 }
  0x88   :  { %1255 = vpow2.f32 %v1066_v13 }
  0x89   :  { %1257 = vtanh.f32 %v120_v17 }
  0x92   :  { %v1256_v18 = vpop.eup %1255 }
  0x93   :  { %v158_v19 = vadd.f32 1.0, %v1256_v18  ;;  %v1258_v20 = vpop.eup %1257  ;;  %v33_v18 = vld [vmem:[%s1676_s0 + $0x10] sm:$0xff] }
  0x95   :  { %1259 = vrcp.f32 %v158_v19 }
  0x96   :  { %1261 = vpow2.f32 %v1067_v29 }
  0x9f   :  { %v1260_v21 = vpop.eup %1259 }
  0xa0   :  { %v169_v22 = vmul.f32 %v1260_v21, %v1258_v20  ;;  %v1262_v44 = vpop.eup %1261  ;;  %v168_v50 = vmul.f32 0.0, %v1260_v21 }
  0xa1   :  { %v165_v48 = vadd.f32 1.0, %v1262_v44 }
  0xa2   :  { %171 = vrot.lane.b32.xlu0 %v169_v22, %s1360_s1 }
  0xa3   :  { %1263 = vrcp.f32 %v165_v48 }
  0xad   :  { %v1264_v54 = vpop.eup %1263 }
 0x114   :  { %v172_v51 = vpop.permute.xlu0 %171 }
 0x115   :  { %v174_v52 = vadd.f32 %v172_v51, %v168_v50 }
 0x117   :  { %1265 = vtanh.f32 %v174_v52  ;;  %186 = vrot.lane.b32.xlu0 %v174_v52, %s1360_s1 }
 0x121   :  { %v1266_v55 = vpop.eup %1265 }
 0x122   :  { %v176_v56 = vmul.f32 %v1266_v55, %v1264_v54  ;;  %v34_v54 = vld [vmem:[%s1676_s0 + $0x18] sm:$0xff] }
 0x124   :  { %181 = vrot.lane.b32.xlu1 %v176_v56, %s1360_s1 }
 0x128   :  { %47 = vperm.xlu1 %1254, %v32_v57  }
 0x189   :  { %v187_v59 = vpop.permute.xlu0 %186 }
 0x18a   :  { %v189_v60 = vsel %vm177_vm0, %v187_v59, 0.0 }
 0x18b   :  { %298 = vrot.lane.b32.xlu1 %v189_v60, %s1360_s1 }
 0x196   :  { %v182_v61 = vpop.permute.xlu1 %181 }
 0x197   :  { %v184_v62 = vsel %vm177_vm0, %v182_v61, 0.0 }
 0x198   :  { %1068 = vmatmul.mubr.msk.f32.vlgmr.msra.gmra.mrb[0].mxu0 %vm209_vm1, %v184_v62 }
 0x199   :  { %1157 = vmatpush1.bf16.msra.mxu0 %v1448_v28  ;;  %483 = vmatprep.mubr.f32.mxu0 %v1361_v53 }
 0x19a   :  { %1159 = vmatprep.subr.bf16.mxu0 %v1460_v32 }
 0x19d   :  { %1161 = vmatpush1.bf16.msra.mxu0 %v1471_v36 }
 0x19e   :  { %1163 = vmatprep.subr.bf16.mxu0 %v1483_v40 }
 0x1a1   :  { %1165 = vmatpush1.bf16.msra.mxu0 %v1493_v43 }
 0x1a2   :  { %1167 = vmatprep.subr.bf16.mxu0 %v1497_v45 }
 0x1a5   :  { %1169 = vmatpush1.bf16.msra.mxu0 %v1507_v49 }
 0x1a6   :  { %1187 = vmatprep.subr.bf16.mxu0 %v1443_v26 }
 0x1a7   :  { %v48_v63 = vpop.permute.xlu1 %47 }
 0x1a8   :  { %v93_v0 = vmul.f32 %v1421_v7, %v48_v63  ;;  %v94_v6 = vmul.f32 %v1427_v14, %v48_v63 }
 0x1aa   :  { %v121_v1 = vadd.f32 %v1423_v8, %v93_v0  ;;  %v122_v9 = vadd.f32 %v1429_v15, %v94_v6 }
 0x1fd   :  { %v299_v21 = vpop.permute.xlu1 %298 }
 0x26b   :  { %v279_v2 = vpop.f32.mrb[0].mxu0 }
 0x26c   :  { %v280_v3 = vadd.f32 %v279_v2, %v121_v1  ;;  %v281_v4 = vpop.f32.mrb[1].mxu0 }
 0x26d   :  { %v282_v10 = vadd.f32 %v281_v4, %v122_v9 }
 0x26e   :  { %v1069_v5 = vmul.f32 -1.442695, %v280_v3 }
 0x26f   :  { %v1070_v19 = vmul.f32 -1.442695, %v282_v10 }
 0x270   :  { %1267 = vpow2.f32 %v1069_v5 }
 0x271   :  { %1269 = vtanh.f32 %v282_v10 }
 0x27a   :  { %v1268_v11 = vpop.eup %1267 }
 0x27b   :  { %v287_v12 = vadd.f32 1.0, %v1268_v11  ;;  %v1270_v13 = vpop.eup %1269 }
 0x27d   :  { %1271 = vrcp.f32 %v287_v12 }
 0x27e   :  { %1273 = vpow2.f32 %v1070_v19  ;;  %v35_v19 = vld [vmem:[%s1676_s0 + $0x20] sm:$0xff] }
 0x287   :  { %v1272_v16 = vpop.eup %1271 }
 0x288   :  { %v302_v17 = vmul.f32 %v1272_v16, %v1270_v13  ;;  %v1274_v20 = vpop.eup %1273  ;;  %v301_v23 = vmul.f32 %v1272_v16, %v299_v21 }
 0x289   :  { %v294_v22 = vadd.f32 1.0, %v1274_v20 }
 0x28a   :  { %304 = vrot.lane.b32.xlu0 %v302_v17, %s1360_s1 }
 0x28b   :  { %1275 = vrcp.f32 %v294_v22 }
 0x28e   :  { %52 = vperm.xlu0 %1253, %v33_v18  }
 0x295   :  { %v1276_v27 = vpop.eup %1275 }
 0x2fc   :  { %v305_v24 = vpop.permute.xlu0 %304 }
 0x2fd   :  { %v307_v25 = vadd.f32 %v305_v24, %v301_v23 }
 0x2ff   :  { %1277 = vtanh.f32 %v307_v25 }
 0x309   :  { %v1278_v29 = vpop.eup %1277 }
 0x30a   :  { %v309_v30 = vmul.f32 %v1278_v29, %v1276_v27 }
 0x30c   :  { %314 = vrot.lane.b32.xlu1 %v309_v30, %s1360_s1 }
 0x30d   :  { %v53_v33 = vpop.permute.xlu0 %52 }
 0x30e   :  { %v95_v34 = vmul.f32 %v1421_v7, %v53_v33  ;;  %v96_v42 = vmul.f32 %v1427_v14, %v53_v33 }
 0x310   :  { %v123_v35 = vadd.f32 %v1423_v8, %v95_v34  ;;  %v124_v44 = vadd.f32 %v1429_v15, %v96_v42 }
 0x37e   :  { %v315_v31 = vpop.permute.xlu1 %314 }
 0x37f   :  { %1071 = vmatmul.mubr.msk.f32.vlgmr.msra.gmra.mrb[0].mxu1 %vm209_vm1, %v315_v31 }
 0x380   :  { %1173 = vmatpush1.bf16.msra.mxu1 %v1448_v28  ;;  %584 = vmatprep.mubr.f32.mxu1 %v1361_v53 }
 0x381   :  { %1175 = vmatprep.subr.bf16.mxu1 %v1460_v32 }
 0x384   :  { %1177 = vmatpush1.bf16.msra.mxu1 %v1471_v36 }
 0x385   :  { %1179 = vmatprep.subr.bf16.mxu1 %v1483_v40 }
 0x388   :  { %1181 = vmatpush1.bf16.msra.mxu1 %v1493_v43 }
 0x389   :  { %1183 = vmatprep.subr.bf16.mxu1 %v1497_v45 }
 0x38c   :  { %1185 = vmatpush1.bf16.msra.mxu1 %v1507_v49 }
 0x38d   :  { %1203 = vmatprep.subr.bf16.mxu1 %v1443_v26 }
 0x452   :  { %v384_v37 = vpop.f32.mrb[0].mxu1 }
 0x453   :  { %v385_v38 = vadd.f32 %v384_v37, %v123_v35  ;;  %v386_v39 = vpop.f32.mrb[1].mxu1 }
 0x454   :  { %v387_v46 = vadd.f32 %v386_v39, %v124_v44 }
 0x455   :  { %v1072_v41 = vmul.f32 -1.442695, %v385_v38 }
 0x456   :  { %v1073_v55 = vmul.f32 -1.442695, %v387_v46 }
 0x457   :  { %1279 = vpow2.f32 %v1072_v41 }
 0x458   :  { %1281 = vtanh.f32 %v387_v46 }
 0x461   :  { %v1280_v47 = vpop.eup %1279 }
 0x462   :  { %v392_v48 = vadd.f32 1.0, %v1280_v47  ;;  %v1282_v50 = vpop.eup %1281 }
 0x464   :  { %1283 = vrcp.f32 %v392_v48 }
 0x465   :  { %1285 = vpow2.f32 %v1073_v55 }
 0x46e   :  { %v1284_v51 = vpop.eup %1283 }
 0x46f   :  { %v403_v52 = vmul.f32 %v1284_v51, %v1282_v50  ;;  %v1286_v56 = vpop.eup %1285  ;;  %v402_v58 = vmul.f32 %v1284_v51, %v307_v25 }
 0x470   :  { %v399_v57 = vadd.f32 1.0, %v1286_v56 }
 0x471   :  { %405 = vrot.lane.b32.xlu1 %v403_v52, %s1360_s1 }
 0x472   :  { %1287 = vrcp.f32 %v399_v57 }
 0x475   :  { %57 = vperm.xlu1 %1254, %v34_v54   ;;  %v36_v54 = vld [vmem:[%s1676_s0 + $0x28] sm:$0xff] }
 0x47c   :  { %v1288_v61 = vpop.eup %1287 }
 0x4e3   :  { %v406_v59 = vpop.permute.xlu1 %405 }
 0x4e4   :  { %v408_v60 = vadd.f32 %v406_v59, %v402_v58 }
 0x4e6   :  { %1289 = vtanh.f32 %v408_v60 }
 0x4f0   :  { %v1290_v62 = vpop.eup %1289 }
 0x4f1   :  { %v410_v63 = vmul.f32 %v1290_v62, %v1288_v61 }
 0x4f3   :  { %415 = vrot.lane.b32.xlu0 %v410_v63, %s1360_s1 }
 0x4f4   :  { %v58_v1 = vpop.permute.xlu1 %57 }
 0x4f5   :  { %v97_v2 = vmul.f32 %v1421_v7, %v58_v1  ;;  %v98_v10 = vmul.f32 %v1427_v14, %v58_v1 }
 0x4f7   :  { %v125_v3 = vadd.f32 %v1423_v8, %v97_v2  ;;  %v126_v11 = vadd.f32 %v1429_v15, %v98_v10 }
 0x565   :  { %v416_v0 = vpop.permute.xlu0 %415 }
 0x566   :  { %1074 = vmatmul.mubr.msk.f32.vlgmr.msra.gmra.mrb[2].mxu0 %vm209_vm1, %v416_v0 }
 0x567   :  { %1189 = vmatpush1.bf16.msra.mxu0 %v1448_v28  ;;  %685 = vmatprep.mubr.f32.mxu0 %v1361_v53 }
 0x568   :  { %1191 = vmatprep.subr.bf16.mxu0 %v1460_v32 }
 0x56b   :  { %1193 = vmatpush1.bf16.msra.mxu0 %v1471_v36 }
 0x56c   :  { %1195 = vmatprep.subr.bf16.mxu0 %v1483_v40 }
 0x56f   :  { %1197 = vmatpush1.bf16.msra.mxu0 %v1493_v43 }
 0x570   :  { %1199 = vmatprep.subr.bf16.mxu0 %v1497_v45 }
 0x573   :  { %1201 = vmatpush1.bf16.msra.mxu0 %v1507_v49 }
 0x574   :  { %1219 = vmatprep.subr.bf16.mxu0 %v1443_v26 }
 0x639   :  { %v485_v4 = vpop.f32.mrb[2].mxu0 }
 0x63a   :  { %v486_v5 = vadd.f32 %v485_v4, %v125_v3  ;;  %v487_v6 = vpop.f32.mrb[3].mxu0 }
 0x63b   :  { %v488_v12 = vadd.f32 %v487_v6, %v126_v11  ;;  %v37_v11 = vld [vmem:[%s1676_s0 + $0x30] sm:$0xff] }
 0x63c   :  { %v1075_v9 = vmul.f32 -1.442695, %v486_v5 }
 0x63d   :  { %v1076_v20 = vmul.f32 -1.442695, %v488_v12 }
 0x63e   :  { %1291 = vpow2.f32 %v1075_v9 }
 0x63f   :  { %1293 = vtanh.f32 %v488_v12 }
 0x648   :  { %v1292_v13 = vpop.eup %1291 }
 0x649   :  { %v493_v16 = vadd.f32 1.0, %v1292_v13  ;;  %v1294_v26 = vpop.eup %1293 }
 0x64b   :  { %1295 = vrcp.f32 %v493_v16 }
 0x64c   :  { %1297 = vpow2.f32 %v1076_v20 }
 0x655   :  { %v1296_v17 = vpop.eup %1295 }
 0x656   :  { %v504_v18 = vmul.f32 %v1296_v17, %v1294_v26  ;;  %v1298_v21 = vpop.eup %1297  ;;  %v503_v23 = vmul.f32 %v1296_v17, %v408_v60 }
 0x657   :  { %v500_v22 = vadd.f32 1.0, %v1298_v21 }
 0x658   :  { %506 = vrot.lane.b32.xlu0 %v504_v18, %s1360_s1 }
 0x659   :  { %1299 = vrcp.f32 %v500_v22 }
 0x65c   :  { %62 = vperm.xlu0 %1253, %v35_v19  }
 0x663   :  { %v1300_v27 = vpop.eup %1299 }
 0x6ca   :  { %v507_v24 = vpop.permute.xlu0 %506 }
 0x6cb   :  { %v509_v25 = vadd.f32 %v507_v24, %v503_v23 }
 0x6cd   :  { %1301 = vtanh.f32 %v509_v25 }
 0x6d7   :  { %v1302_v29 = vpop.eup %1301 }
 0x6d8   :  { %v511_v30 = vmul.f32 %v1302_v29, %v1300_v27 }
 0x6da   :  { %516 = vrot.lane.b32.xlu1 %v511_v30, %s1360_s1 }
 0x6db   :  { %v63_v33 = vpop.permute.xlu0 %62 }
 0x6dc   :  { %v99_v34 = vmul.f32 %v1421_v7, %v63_v33  ;;  %v100_v42 = vmul.f32 %v1427_v14, %v63_v33 }
 0x6de   :  { %v127_v35 = vadd.f32 %v1423_v8, %v99_v34  ;;  %v128_v44 = vadd.f32 %v1429_v15, %v100_v42 }
 0x74c   :  { %v517_v31 = vpop.permute.xlu1 %516 }
 0x74d   :  { %1077 = vmatmul.mubr.msk.f32.vlgmr.msra.gmra.mrb[2].mxu1 %vm209_vm1, %v517_v31 }
 0x74e   :  { %1205 = vmatpush1.bf16.msra.mxu1 %v1448_v28  ;;  %786 = vmatprep.mubr.f32.mxu1 %v1361_v53 }
 0x74f   :  { %1207 = vmatprep.subr.bf16.mxu1 %v1460_v32 }
 0x752   :  { %1209 = vmatpush1.bf16.msra.mxu1 %v1471_v36 }
 0x753   :  { %1211 = vmatprep.subr.bf16.mxu1 %v1483_v40 }
 0x756   :  { %1213 = vmatpush1.bf16.msra.mxu1 %v1493_v43 }
 0x757   :  { %1215 = vmatprep.subr.bf16.mxu1 %v1497_v45 }
 0x75a   :  { %1217 = vmatpush1.bf16.msra.mxu1 %v1507_v49 }
 0x820   :  { %v586_v37 = vpop.f32.mrb[2].mxu1 }
 0x821   :  { %v587_v38 = vadd.f32 %v586_v37, %v127_v35  ;;  %v588_v39 = vpop.f32.mrb[3].mxu1 }
 0x822   :  { %v589_v46 = vadd.f32 %v588_v39, %v128_v44  ;;  %v38_v44 = vld [vmem:[%s1676_s0 + $0x38] sm:$0xff] }
 0x823   :  { %v1078_v41 = vmul.f32 -1.442695, %v587_v38 }
 0x824   :  { %v1079_v55 = vmul.f32 -1.442695, %v589_v46 }
 0x825   :  { %1303 = vpow2.f32 %v1078_v41 }
 0x826   :  { %1305 = vtanh.f32 %v589_v46 }
 0x82f   :  { %v1304_v47 = vpop.eup %1303 }
 0x830   :  { %v594_v48 = vadd.f32 1.0, %v1304_v47  ;;  %v1306_v50 = vpop.eup %1305 }
 0x832   :  { %1307 = vrcp.f32 %v594_v48 }
 0x833   :  { %1309 = vpow2.f32 %v1079_v55 }
 0x83c   :  { %v1308_v51 = vpop.eup %1307 }
 0x83d   :  { %v605_v52 = vmul.f32 %v1308_v51, %v1306_v50  ;;  %v1310_v56 = vpop.eup %1309  ;;  %v604_v58 = vmul.f32 %v1308_v51, %v509_v25 }
 0x83e   :  { %v601_v57 = vadd.f32 1.0, %v1310_v56 }
 0x83f   :  { %607 = vrot.lane.b32.xlu1 %v605_v52, %s1360_s1 }
 0x840   :  { %1311 = vrcp.f32 %v601_v57 }
 0x843   :  { %67 = vperm.xlu1 %1254, %v36_v54  }
 0x84a   :  { %v1312_v61 = vpop.eup %1311 }
 0x8b1   :  { %v608_v59 = vpop.permute.xlu1 %607 }
 0x8b2   :  { %v610_v60 = vadd.f32 %v608_v59, %v604_v58 }
 0x8b4   :  { %1313 = vtanh.f32 %v610_v60 }
 0x8be   :  { %v1314_v62 = vpop.eup %1313 }
 0x8bf   :  { %v612_v63 = vmul.f32 %v1314_v62, %v1312_v61 }
 0x8c1   :  { %617 = vrot.lane.b32.xlu0 %v612_v63, %s1360_s1 }
 0x8c2   :  { %v68_v1 = vpop.permute.xlu1 %67 }
 0x8c3   :  { %v101_v2 = vmul.f32 %v1421_v7, %v68_v1 }
 0x8c5   :  { %v129_v3 = vadd.f32 %v1423_v8, %v101_v2 }
 0x933   :  { %v618_v0 = vpop.permute.xlu0 %617 }
 0x934   :  { %1080 = vmatmul.mubr.msk.f32.vlgmr.msra.gmra.mrb[4].mxu0 %vm209_vm1, %v618_v0 }
 0x935   :  { %1221 = vmatpush1.bf16.msra.mxu0 %v1448_v28  ;;  %887 = vmatprep.mubr.f32.mxu0 %v1361_v53 }
 0x936   :  { %1223 = vmatprep.subr.bf16.mxu0 %v1460_v32  ;;  %v102_v32 = vmul.f32 %v1427_v14, %v68_v1 }
 0x939   :  { %1225 = vmatpush1.bf16.msra.mxu0 %v1471_v36  ;;  %v130_v36 = vadd.f32 %v1429_v15, %v102_v32 }
 0x93a   :  { %1227 = vmatprep.subr.bf16.mxu0 %v1483_v40 }
 0x93d   :  { %1229 = vmatpush1.bf16.msra.mxu0 %v1493_v43 }
 0x93e   :  { %1231 = vmatprep.subr.bf16.mxu0 %v1497_v45 }
 0x941   :  { %1233 = vmatpush1.bf16.msra.mxu0 %v1507_v49 }
 0xa07   :  { %v687_v28 = vpop.f32.mrb[4].mxu0 }
 0xa08   :  { %v688_v4 = vadd.f32 %v687_v28, %v129_v3  ;;  %v689_v5 = vpop.f32.mrb[5].mxu0 }
 0xa09   :  { %v690_v40 = vadd.f32 %v689_v5, %v130_v36 }
 0xa0a   :  { %v1081_v6 = vmul.f32 -1.442695, %v688_v4 }
 0xa0b   :  { %v1082_v12 = vmul.f32 -1.442695, %v690_v40 }
 0xa0c   :  { %1315 = vpow2.f32 %v1081_v6 }
 0xa0d   :  { %1317 = vtanh.f32 %v690_v40  ;;  %v919_v40 = vld [vmem:[%s1680_s4 + $0x18] sm:$0xff] }
 0xa16   :  { %v1316_v43 = vpop.eup %1315 }
 0xa17   :  { %v695_v9 = vadd.f32 1.0, %v1316_v43  ;;  %v1318_v45 = vpop.eup %1317 }
 0xa19   :  { %1319 = vrcp.f32 %v695_v9  ;;  %v920_v9 = vld [vmem:[%s1680_s4 + $0x20] sm:$0xff] }
 0xa1a   :  { %1321 = vpow2.f32 %v1082_v12 }
 0xa23   :  { %v1320_v49 = vpop.eup %1319 }
 0xa24   :  { %v706_v10 = vmul.f32 %v1320_v49, %v1318_v45  ;;  %v1322_v13 = vpop.eup %1321  ;;  %v705_v26 = vmul.f32 %v1320_v49, %v610_v60  ;;  %v921_v45 = vld [vmem:[%s1680_s4 + $0x28] sm:$0xff] }
 0xa25   :  { %v702_v16 = vadd.f32 1.0, %v1322_v13  ;;  %v1241_v49 = vpack.c.bf16 %v921_v45, %v920_v9 }
 0xa26   :  { %708 = vrot.lane.b32.xlu0 %v706_v10, %s1360_s1  ;;  %v923_v10 = vld [vmem:[%s1680_s4 + $0x38] sm:$0xff] }
 0xa27   :  { %1323 = vrcp.f32 %v702_v16 }
 0xa2a   :  { %72 = vperm.xlu0 %1253, %v37_v11  }
 0xa31   :  { %v1324_v19 = vpop.eup %1323 }
 0xa98   :  { %v709_v17 = vpop.permute.xlu0 %708 }
 0xa99   :  { %v711_v18 = vadd.f32 %v709_v17, %v705_v26 }
 0xa9b   :  { %1325 = vtanh.f32 %v711_v18 }
 0xaa5   :  { %v1326_v20 = vpop.eup %1325 }
 0xaa6   :  { %v713_v21 = vmul.f32 %v1326_v20, %v1324_v19 }
 0xaa8   :  { %718 = vrot.lane.b32.xlu1 %v713_v21, %s1360_s1 }
 0xaa9   :  { %v73_v23 = vpop.permute.xlu0 %72 }
 0xaaa   :  { %v103_v24 = vmul.f32 %v1421_v7, %v73_v23  ;;  %v104_v33 = vmul.f32 %v1427_v14, %v73_v23  ;;  %v1089_v23 = vld [vmem:[%s1681_s5] ss:$0 sm:$0xff]  ;;  %s1365_s5 = smov 96  }
 0xaac   :  { %v131_v25 = vadd.f32 %v1423_v8, %v103_v24  ;;  %v132_v34 = vadd.f32 %v1429_v15, %v104_v33 }
 0xb1a   :  { %v719_v22 = vpop.permute.xlu1 %718 }
 0xb1b   :  { %1083 = vmatmul.mubr.msk.f32.vlgmr.msra.gmra.mrb[4].mxu1 %vm209_vm1, %v719_v22 }
 0xb1c   :  { %1119 = vmatprep.mubr.msk.f32.mxu1 %vm1363_vm2, %v1361_v53  ;;  %v922_v53 = vld [vmem:[%s1680_s4 + $0x30] sm:$0xff] }
 0xb1d   :  { %v1244_v11 = vpack.c.bf16 %v923_v10, %v922_v53 }
 0xbee   :  { %v788_v27 = vpop.f32.mrb[4].mxu1 }
 0xbef   :  { %v789_v29 = vadd.f32 %v788_v27, %v131_v25  ;;  %v790_v30 = vpop.f32.mrb[5].mxu1 }
 0xbf0   :  { %v791_v35 = vadd.f32 %v790_v30, %v132_v34 }
 0xbf1   :  { %v1084_v31 = vmul.f32 -1.442695, %v789_v29 }
 0xbf2   :  { %v1085_v46 = vmul.f32 -1.442695, %v791_v35 }
 0xbf3   :  { %1327 = vpow2.f32 %v1084_v31 }
 0xbf4   :  { %1329 = vtanh.f32 %v791_v35 }
 0xbfd   :  { %v1328_v37 = vpop.eup %1327 }
 0xbfe   :  { %v796_v38 = vadd.f32 1.0, %v1328_v37  ;;  %v1330_v39 = vpop.eup %1329 }
 0xc00   :  { %1331 = vrcp.f32 %v796_v38  ;;  %v1092_v38 = vld [vmem:[%s1682_s6] ss:$0 sm:$0xff] }
 0xc01   :  { %1333 = vpow2.f32 %v1085_v46 }
 0xc0a   :  { %v1332_v41 = vpop.eup %1331 }
 0xc0b   :  { %v807_v42 = vmul.f32 %v1332_v41, %v1330_v39  ;;  %v1334_v47 = vpop.eup %1333  ;;  %v806_v50 = vmul.f32 %v1332_v41, %v711_v18 }
 0xc0c   :  { %v803_v48 = vadd.f32 1.0, %v1334_v47  ;;  %v13_v47 = vstv %s1683_s7 }
 0xc0d   :  { %809 = vrot.lane.b32.xlu1 %v807_v42, %s1360_s1  ;;  %14 = vst [vmem:[#allocation3] sm:$0x1] %v13_v47 }
 0xc0e   :  { %1335 = vrcp.f32 %v803_v48 }
 0xc11   :  { %77 = vperm.xlu1 %1254, %v38_v44  }
 0xc18   :  { %v1336_v54 = vpop.eup %1335 }
 0xc7f   :  { %v810_v51 = vpop.permute.xlu1 %809 }
 0xc80   :  { %v812_v52 = vadd.f32 %v810_v51, %v806_v50 }
 0xc82   :  { %1337 = vtanh.f32 %v812_v52 }
 0xc8c   :  { %v1338_v55 = vpop.eup %1337 }
 0xc8d   :  { %v814_v56 = vmul.f32 %v1338_v55, %v1336_v54 }
 0xc8f   :  { %819 = vrot.lane.b32.xlu0 %v814_v56, %s1360_s1  ;;  %v1093_v56 = vld [vmem:[#allocation3] ss:$0 sm:$0xff] }
 0xc90   :  { %v78_v58 = vpop.permute.xlu1 %77 }
 0xc91   :  { %v105_v59 = vmul.f32 %v1421_v7, %v78_v58  ;;  %v106_v1 = vmul.f32 %v1427_v14, %v78_v58  ;;  %v1362_v7 = vmov 0.0|0.0   ;;  %v917_v14 = vld [vmem:[%s1680_s4 + $0x8] sm:$0xff] }
 0xc92   :  { %1234 = vmatprep.subr.bf16.mxu1 %v1362_v7 }
 0xc93   :  { %v133_v60 = vadd.f32 %v1423_v8, %v105_v59  ;;  %v134_v2 = vadd.f32 %v1429_v15, %v106_v1  ;;  %v916_v8 = vld [vmem:[%s1680_s4] sm:$0xff]  ;;  %v918_v15 = vld [vmem:[%s1680_s4 + $0x10] sm:$0xff] }
 0xc94   :  { %v1235_v36 = vpack.c.bf16 %v917_v14, %v916_v8  ;;  %v1238_v43 = vpack.c.bf16 %v919_v40, %v918_v15 }
 0xc96   :  { %1236 = vmatpush3.bf16.msra.mxu1 %v1235_v36 }
 0xc97   :  { %1237 = vmatprep.subr.bf16.mxu1 %v1362_v7 }
 0xc9a   :  { %1239 = vmatpush3.bf16.msra.mxu1 %v1238_v43 }
 0xc9b   :  { %1240 = vmatprep.subr.bf16.mxu1 %v1362_v7 }
 0xc9e   :  { %1242 = vmatpush3.bf16.msra.mxu1 %v1241_v49 }
 0xc9f   :  { %1243 = vmatprep.subr.bf16.mxu1 %v1362_v7 }
 0xca2   :  { %1245 = vmatpush3.bf16.msra.mxu1 %v1244_v11 }
 0xd01   :  { %v820_v57 = vpop.permute.xlu0 %819 }
 0xd02   :  { %1086 = vmatmul.mubr.msk.f32.vlgmr.msra.gmra.mrb[6].mxu0 %vm209_vm1, %v820_v57 }
 0xdd5   :  { %v889_v61 = vpop.f32.mrb[6].mxu0 }
 0xdd6   :  { %v890_v62 = vadd.f32 %v889_v61, %v133_v60  ;;  %v891_v63 = vpop.f32.mrb[7].mxu0 }
 0xdd7   :  { %v892_v3 = vadd.f32 %v891_v63, %v134_v2 }
 0xdd8   :  { %v1087_v0 = vmul.f32 -1.442695, %v890_v62 }
 0xdd9   :  { %v1088_v12 = vmul.f32 -1.442695, %v892_v3 }
 0xdda   :  { %1339 = vpow2.f32 %v1087_v0 }
 0xddb   :  { %1341 = vtanh.f32 %v892_v3 }
 0xde4   :  { %v1340_v28 = vpop.eup %1339 }
 0xde5   :  { %v897_v4 = vadd.f32 1.0, %v1340_v28  ;;  %v1342_v5 = vpop.eup %1341 }
 0xde7   :  { %1343 = vrcp.f32 %v897_v4 }
 0xde8   :  { %1345 = vpow2.f32 %v1088_v12 }
 0xdf1   :  { %v1344_v6 = vpop.eup %1343 }
 0xdf2   :  { %v908_v32 = vmul.f32 %v1344_v6, %v1342_v5  ;;  %v1346_v13 = vpop.eup %1345  ;;  %v907_v26 = vmul.f32 %v1344_v6, %v812_v52 }
 0xdf3   :  { %v904_v16 = vadd.f32 1.0, %v1346_v13 }
 0xdf4   :  { %910 = vrot.lane.b32.xlu0 %v908_v32, %s1360_s1 }
 0xdf5   :  { %1347 = vrcp.f32 %v904_v16 }
 0xdff   :  { %v1348_v19 = vpop.eup %1347 }
 0xe66   :  { %v911_v17 = vpop.permute.xlu0 %910 }
 0xe67   :  { %v913_v18 = vadd.f32 %v911_v17, %v907_v26 }
 0xe69   :  { %1349 = vtanh.f32 %v913_v18 }
 0xe73   :  { %v1350_v20 = vpop.eup %1349 }
 0xe74   :  { %v915_v21 = vmul.f32 %v1350_v20, %v1348_v19 }
 0xe76   :  { %932 = vrot.lane.b32.xlu1 %v915_v21, %s1360_s1 }
 0xe7a   :  { %1014 = vrot.lane.b32.xlu1 %v913_v18, %s1360_s1 }
 0xee8   :  { %v933_v22 = vpop.permute.xlu1 %932 }
 0xee9   :  { %1120 = vmatmul.mubr.msk.f32.vlgmr.msra.gmra.mrb[6].mxu1 %vm209_vm1, %v933_v22 }
 0xeec   :  { %v1015_v39 = vpop.permute.xlu1 %1014 }
 0xfbc   :  { %v1002_v24 = vpop.f32.mrb[6].mxu1 }
 0xfbd   :  { %v1003_v25 = vadd.f32 %v1089_v23, %v1002_v24  ;;  %v1121_v27 = vpop.f32.mrb[7].mxu1 }
 0xfbf   :  { %1351 = vtanh.f32 %v1003_v25  ;;  %v1091_v30 = vmul.f32 -1.442695, %v1003_v25 }
 0xfc1   :  { %1353 = vpow2.f32 %v1091_v30 }
 0xfc9   :  { %v1352_v29 = vpop.eup %1351 }
 0xfca   :  { %1019 = vrot.lane.b32.xlu0 %v1352_v29, %s1360_s1 }
 0xfcb   :  { %v1354_v31 = vpop.eup %1353 }
 0xfcc   :  { %v1009_v33 = vadd.f32 1.0, %v1354_v31 }
 0xfce   :  { %1355 = vrcp.f32 %v1009_v33 }
 0xfd8   :  { %v1356_v34 = vpop.eup %1355 }
 0xfd9   :  { %v1017_v41 = vmul.f32 %v1356_v34, %v1015_v39 }
0x103c   :  { %v1020_v35 = vpop.permute.xlu0 %1019 }
0x103d   :  { %v1022_v37 = vmul.f32 %v1356_v34, %v1020_v35 }
0x103f   :  { %1024 = vrot.lane.b32.xlu0 %v1022_v37, %s1364_s24 }
0x1043   :  { %1040 = vrot.lane.b32.xlu0 %v1092_v38, %s1365_s5 }
0x10b1   :  { %v1025_v42 = vpop.permute.xlu0 %1024 }
0x10b2   :  { %v1027_v44 = vadd.f32 %v1025_v42, %v1017_v41 }
0x10b4   :  { %1357 = vtanh.f32 %v1027_v44 }
0x10b5   :  { %v1041_v50 = vpop.permute.xlu0 %1040 }
0x10be   :  { %v1358_v46 = vpop.eup %1357 }
0x10bf   :  { %1030 = vrot.lane.b32.xlu1 %v1358_v46, %s1360_s1 }
0x1131   :  { %v1031_v48 = vpop.permute.xlu1 %1030 }
0x1132   :  { %v1033_v51 = vmul.f32 %v1356_v34, %v1031_v48 }
0x1134   :  { %v1043_v52 = vmul.f32 %v1041_v50, %v1033_v51 }
0x1136   :  { %1045 = vrot.lane.b32.xlu1 %v1043_v52, %s1364_s24 }
0x11a8   :  { %v1046_v54 = vpop.permute.xlu1 %1045 }
0x11a9   :  { %v1049_v55 = vsel %vm1048_vm3, %v1046_v54, 0.0 }
0x11aa   :  { %1050 = vadd.xlane.f32.xlu0 %v1049_v55 }
0x1237   :  { %v1051_v57 = vpop.xlane.xlu0 %1050 }
0x1238   :  { %v1059_v58 = vadd.f32 %v1093_v56, %v1051_v57 }
0x123a   :  { %1061 = vst.msk [vmem:[%s1684_s8] sm:$0xff] %vm1060_vm4, %v1059_v58 }

</bundles_post_ra>
